<compile_context>
chip_gen: v6e
topology: v6e:2x2x1
jax: 0.10.0
libtpu: 0.0.40
codegen_flags: <defaults>
</compile_context>

<pallas_src>
import functools

import jax
import jax.numpy as jnp
from jax.experimental import pallas as pl
from jax.experimental.pallas import tpu as pltpu


# ----------------------------- Pallas kernel -----------------------------

def _fused_encoder_kernel(*refs, n_hidden: int):
    """refs = (x, w0, b0, ..., w_{n-1}, b_{n-1}, w_head, b_head, out).

    Computes h = ReLU(...ReLU(x @ W0 + b0)...); out = h @ W_head + b_head
    entirely in VMEM for one batch tile.  Weights are stored bf16 and upcast
    (exactly) to f32; matmul accumulation, bias-add and ReLU are all f32.
    """
    x_ref, o_ref = refs[0], refs[-1]
    wb_refs = refs[1:-1]

    h = x_ref[...]                                      # (TM, D_in) f32
    for li in range(n_hidden + 1):                      # hidden layers + merged head
        w = wb_refs[2 * li][...].astype(jnp.float32)    # bf16 -> f32 (exact upcast)
        b = wb_refs[2 * li + 1][...]                    # (1, D_out) f32, broadcast
        y = jnp.dot(h, w, preferred_element_type=jnp.float32) + b
        h = jnp.maximum(y, 0.0) if li < n_hidden else y
    o_ref[...] = h.astype(o_ref.dtype)


def _pick_batch_tile(B):
    """Batch tile size.

    Small batches: one block covering the whole batch dim (block == full array
    dim is exempt from the (8,128) divisibility rule -> no wrapper padding).
    Large batches: 256/128/... rows to fill the MXU (2x256^2 on v6e/v7x).
    """
    if B <= 256:
        return B
    for tm in (256, 128, 64, 32, 16, 8):
        if B % tm == 0:
            return tm
    return B  # ragged fallback: whole batch in a single block


def fused_encoder(x, net, head):
    """x: (B, D_in) f32; net: [(W bf16 (D_i, D_{i+1}), b f32 (1, D_{i+1})), ...];
    head: (W_head bf16 (D_h, out_pad), b_head f32 (1, out_pad)) -> (B, out_pad) f32."""
    B, d_in = x.shape
    out_pad = head[0].shape[1]
    tm = _pick_batch_tile(B)
    grid = (B // tm,)

    # All weights live as full-array VMEM-resident blocks.  Guard the footprint;
    # v7x has only 64 MiB physical VMEM (32 MiB default scoped).
    weight_bytes = sum(w.size * w.dtype.itemsize + b.size * b.dtype.itemsize
                       for w, b in list(net) + [head])
    assert weight_bytes < 20 * (1 << 20), (
        "weights too large for the all-resident fused design")
    # TODO(synk): if the MLP grows past ~20 MiB of weights, K-tile the first
    # layer with pltpu.emit_pipeline instead of keeping it fully resident.

    args = [x]
    specs = [pl.BlockSpec((tm, d_in), lambda i: (i, 0))]
    for w, b in list(net) + [head]:
        args += [w, b]
        # Constant block index across the batch grid -> Pallas fetches each
        # weight/bias once and keeps it in VMEM for every batch tile.
        specs += [pl.BlockSpec(w.shape, lambda i: (0, 0)),
                  pl.BlockSpec(b.shape, lambda i: (0, 0))]

    return pl.pallas_call(
        functools.partial(_fused_encoder_kernel, n_hidden=len(net)),
        out_shape=jax.ShapeDtypeStruct((B, out_pad), jnp.float32),
        grid=grid,
        in_specs=specs,
        out_specs=pl.BlockSpec((tm, out_pad), lambda i: (i, 0)),
        compiler_params=pltpu.CompilerParams(
            dimension_semantics=("parallel",)),   # v7x: both TCs split batch tiles
    )(*args)


# --------------------------- parameter creation ---------------------------

def _torch_linear_init(key, fan_in, fan_out):
    """Emulate nn.Linear default init: U(-1/sqrt(fan_in), +1/sqrt(fan_in))."""
    kw, kb = jax.random.split(key)
    bound = 1.0 / float(fan_in) ** 0.5
    w = jax.random.uniform(kw, (fan_in, fan_out), jnp.float32, -bound, bound)
    b = jax.random.uniform(kb, (fan_out,), jnp.float32, -bound, bound)
    return w, b


def make_vae_encoder_params(key, hidden_sizes, z_dim, n_channels, n_rows, n_cols):
    input_dim = n_channels * n_rows * n_cols
    sizes = [input_dim] + list(hidden_sizes)
    keys = jax.random.split(key, len(sizes) - 1 + 2)

    net = []
    for i in range(len(sizes) - 1):
        w, b = _torch_linear_init(keys[i], sizes[i], sizes[i + 1])
        net.append((w.astype(jnp.bfloat16), b.reshape(1, -1)))   # bf16 W, f32 b

    # Merge mu/sigma heads into a single lane-dense matmul: columns
    # [0:z_dim] = mu, [z_dim:2z_dim] = sigma, zero-padded to a 128 multiple.
    w_mu, b_mu = _torch_linear_init(keys[-2], sizes[-1], z_dim)
    w_sg, b_sg = _torch_linear_init(keys[-1], sizes[-1], z_dim)
    out_pad = pl.cdiv(2 * z_dim, 128) * 128
    w_head = jnp.zeros((sizes[-1], out_pad), jnp.float32)
    w_head = w_head.at[:, :z_dim].set(w_mu).at[:, z_dim:2 * z_dim].set(w_sg)
    b_head = jnp.zeros((1, out_pad), jnp.float32)
    b_head = b_head.at[0, :z_dim].set(b_mu).at[0, z_dim:2 * z_dim].set(b_sg)

    return {"net": net, "head": (w_head.astype(jnp.bfloat16), b_head)}


# ------------------------------ forward pass ------------------------------

def vae_encoder_forward(params, x_nchw, *, z_dim):
    """x_nchw: (B, C, H, W) f32 -> (mu, sigma), each (B, z_dim)."""
    B = x_nchw.shape[0]
    x = x_nchw.reshape(B, -1).astype(jnp.float32)   # row-major flatten == torch .view(B, -1)
    out = fused_encoder(x, params["net"], params["head"])
    # NOTE: downstream consumers that fuse reparameterization can take the
    # (B, out_pad) slab directly; here we return (mu, sigma) per the module.
    return out[:, :z_dim], out[:, z_dim:2 * z_dim]


def vae_encoder_reference(params, x_nchw, *, z_dim):
    """Pure-JAX reference (same bf16-quantized weights, f32 activations)."""
    B = x_nchw.shape[0]
    h = x_nchw.reshape(B, -1).astype(jnp.float32)
    for w, b in params["net"]:
        h = jnp.maximum(h @ w.astype(jnp.float32) + b, 0.0)
    w_head, b_head = params["head"]
    y = h @ w_head.astype(jnp.float32) + b_head
    return y[:, :z_dim], y[:, z_dim:2 * z_dim]


# ---------------------------------- main ----------------------------------

if __name__ == "__main__":
    batch = 2
    n_channels, n_rows, n_cols = 4, 16, 16          # input_dim = 1024
    hidden_sizes = [256, 128]
    z_dim = 32

    root = jax.random.PRNGKey(0)
    k_params, k_x = jax.random.split(root)

    params = make_vae_encoder_params(
        k_params, hidden_sizes, z_dim, n_channels, n_rows, n_cols
    )
    x = jax.random.normal(k_x, (batch, n_channels, n_rows, n_cols), jnp.float32)

    fwd = jax.jit(functools.partial(vae_encoder_forward, z_dim=z_dim))
    mu, sigma = fwd(params, x)
    jax.block_until_ready((mu, sigma))

    mu_ref, sigma_ref = vae_encoder_reference(params, x, z_dim=z_dim)
    assert mu.shape == (batch, z_dim) and sigma.shape == (batch, z_dim)
    # Kernel and reference both use f32 activations with identical bf16-quantized
    # weights; tolerance covers MXU-pass / XLA matmul precision differences.
    assert jnp.allclose(mu, mu_ref, atol=2e-2, rtol=2e-2)
    assert jnp.allclose(sigma, sigma_ref, atol=2e-2, rtol=2e-2)

    print("KERNEL_OK")
</pallas_src>

<mosaic_0001>
module attributes {stable_mosaic.version = 11 : i64} {
  func.func @_fused_encoder_kernel(%arg0: i32, %arg1: memref<2x1024xf32, #tpu.memory_space<vmem>>, %arg2: memref<1024x256xbf16, #tpu.memory_space<vmem>>, %arg3: memref<1x256xf32, #tpu.memory_space<vmem>>, %arg4: memref<256x128xbf16, #tpu.memory_space<vmem>>, %arg5: memref<1x128xf32, #tpu.memory_space<vmem>>, %arg6: memref<128x128xbf16, #tpu.memory_space<vmem>>, %arg7: memref<1x128xf32, #tpu.memory_space<vmem>>, %arg8: memref<2x128xf32, #tpu.memory_space<vmem>>) attributes {dimension_semantics = [#tpu.dimension_semantics<parallel>], iteration_bounds = array<i64: 1>, scalar_prefetch = 0 : i64, scratch_operands = 0 : i64, tpu.core_type = #tpu.core_type<tc>, window_params = [{transform_indices = @transform_0, window_bounds = array<i64: 2, 1024>}, {pipeline_mode = #tpu.pipeline_mode<synchronous>, transform_indices = @transform_1, window_bounds = array<i64: 1024, 256>}, {pipeline_mode = #tpu.pipeline_mode<synchronous>, transform_indices = @transform_2, window_bounds = array<i64: 1, 256>}, {pipeline_mode = #tpu.pipeline_mode<synchronous>, transform_indices = @transform_3, window_bounds = array<i64: 256, 128>}, {pipeline_mode = #tpu.pipeline_mode<synchronous>, transform_indices = @transform_4, window_bounds = array<i64: 1, 128>}, {pipeline_mode = #tpu.pipeline_mode<synchronous>, transform_indices = @transform_5, window_bounds = array<i64: 128, 128>}, {pipeline_mode = #tpu.pipeline_mode<synchronous>, transform_indices = @transform_6, window_bounds = array<i64: 1, 128>}, {transform_indices = @transform_7, window_bounds = array<i64: 2, 128>}]} {
    %c0 = arith.constant 0 : index
    %c0_0 = arith.constant 0 : index
    %0 = vector.load %arg1[%c0, %c0_0] : memref<2x1024xf32, #tpu.memory_space<vmem>>, vector<2x1024xf32>
    %c0_1 = arith.constant 0 : index
    %c0_2 = arith.constant 0 : index
    %1 = vector.load %arg2[%c0_1, %c0_2] : memref<1024x256xbf16, #tpu.memory_space<vmem>>, vector<1024x256xbf16>
    %2 = arith.extf %1 : vector<1024x256xbf16> to vector<1024x256xf32>
    %c0_3 = arith.constant 0 : index
    %c0_4 = arith.constant 0 : index
    %3 = vector.load %arg3[%c0_3, %c0_4] : memref<1x256xf32, #tpu.memory_space<vmem>>, vector<1x256xf32>
    %cst = arith.constant dense<0.000000e+00> : vector<2x256xf32>
    %4 = tpu.matmul %0, %2, %cst {dimension_numbers = #tpu.dot_dimension_numbers<[1], [0], [0], [1], [0, 0, 1, 1], [], []>} : vector<2x1024xf32>, vector<1024x256xf32>, vector<2x256xf32> -> vector<2x256xf32>
    %5 = vector.broadcast %3 : vector<1x256xf32> to vector<2x256xf32>
    %6 = arith.addf %4, %5 : vector<2x256xf32>
    %cst_5 = arith.constant 0.000000e+00 : f32
    %7 = vector.broadcast %cst_5 : f32 to vector<2x256xf32>
    %8 = arith.maximumf %6, %7 : vector<2x256xf32>
    %c0_6 = arith.constant 0 : index
    %c0_7 = arith.constant 0 : index
    %9 = vector.load %arg4[%c0_6, %c0_7] : memref<256x128xbf16, #tpu.memory_space<vmem>>, vector<256x128xbf16>
    %10 = arith.extf %9 : vector<256x128xbf16> to vector<256x128xf32>
    %c0_8 = arith.constant 0 : index
    %c0_9 = arith.constant 0 : index
    %11 = vector.load %arg5[%c0_8, %c0_9] : memref<1x128xf32, #tpu.memory_space<vmem>>, vector<1x128xf32>
    %cst_10 = arith.constant dense<0.000000e+00> : vector<2x128xf32>
    %12 = tpu.matmul %8, %10, %cst_10 {dimension_numbers = #tpu.dot_dimension_numbers<[1], [0], [0], [1], [0, 0, 1, 1], [], []>} : vector<2x256xf32>, vector<256x128xf32>, vector<2x128xf32> -> vector<2x128xf32>
    %13 = vector.broadcast %11 : vector<1x128xf32> to vector<2x128xf32>
    %14 = arith.addf %12, %13 : vector<2x128xf32>
    %cst_11 = arith.constant 0.000000e+00 : f32
    %15 = vector.broadcast %cst_11 : f32 to vector<2x128xf32>
    %16 = arith.maximumf %14, %15 : vector<2x128xf32>
    %c0_12 = arith.constant 0 : index
    %c0_13 = arith.constant 0 : index
    %17 = vector.load %arg6[%c0_12, %c0_13] : memref<128x128xbf16, #tpu.memory_space<vmem>>, vector<128x128xbf16>
    %18 = arith.extf %17 : vector<128x128xbf16> to vector<128x128xf32>
    %c0_14 = arith.constant 0 : index
    %c0_15 = arith.constant 0 : index
    %19 = vector.load %arg7[%c0_14, %c0_15] : memref<1x128xf32, #tpu.memory_space<vmem>>, vector<1x128xf32>
    %cst_16 = arith.constant dense<0.000000e+00> : vector<2x128xf32>
    %20 = tpu.matmul %16, %18, %cst_16 {dimension_numbers = #tpu.dot_dimension_numbers<[1], [0], [0], [1], [0, 0, 1, 1], [], []>} : vector<2x128xf32>, vector<128x128xf32>, vector<2x128xf32> -> vector<2x128xf32>
    %21 = vector.broadcast %19 : vector<1x128xf32> to vector<2x128xf32>
    %22 = arith.addf %20, %21 : vector<2x128xf32>
    %c0_17 = arith.constant 0 : index
    %c0_18 = arith.constant 0 : index
    %23 = vector.load %arg8[%c0_17, %c0_18] : memref<2x128xf32, #tpu.memory_space<vmem>>, vector<2x128xf32>
    tpu.vector_store %arg8[%c0_17, %c0_18], %22 {strides = array<i32>} : memref<2x128xf32, #tpu.memory_space<vmem>>, vector<2x128xf32>,
    return
  }
  func.func @transform_0(%arg0: i32) -> (i32, i32) {
    %c0_i32 = arith.constant 0 : i32
    %c0_i32_0 = arith.constant 0 : i32
    return %arg0, %c0_i32 : i32, i32
  }
  func.func @transform_1(%arg0: i32) -> (i32, i32) {
    %c0_i32 = arith.constant 0 : i32
    %c0_i32_0 = arith.constant 0 : i32
    %c0_i32_1 = arith.constant 0 : i32
    return %c0_i32, %c0_i32_0 : i32, i32
  }
  func.func @transform_2(%arg0: i32) -> (i32, i32) {
    %c0_i32 = arith.constant 0 : i32
    %c0_i32_0 = arith.constant 0 : i32
    %c0_i32_1 = arith.constant 0 : i32
    return %c0_i32, %c0_i32_0 : i32, i32
  }
  func.func @transform_3(%arg0: i32) -> (i32, i32) {
    %c0_i32 = arith.constant 0 : i32
    %c0_i32_0 = arith.constant 0 : i32
    %c0_i32_1 = arith.constant 0 : i32
    return %c0_i32, %c0_i32_0 : i32, i32
  }
  func.func @transform_4(%arg0: i32) -> (i32, i32) {
    %c0_i32 = arith.constant 0 : i32
    %c0_i32_0 = arith.constant 0 : i32
    %c0_i32_1 = arith.constant 0 : i32
    return %c0_i32, %c0_i32_0 : i32, i32
  }
  func.func @transform_5(%arg0: i32) -> (i32, i32) {
    %c0_i32 = arith.constant 0 : i32
    %c0_i32_0 = arith.constant 0 : i32
    %c0_i32_1 = arith.constant 0 : i32
    return %c0_i32, %c0_i32_0 : i32, i32
  }
  func.func @transform_6(%arg0: i32) -> (i32, i32) {
    %c0_i32 = arith.constant 0 : i32
    %c0_i32_0 = arith.constant 0 : i32
    %c0_i32_1 = arith.constant 0 : i32
    return %c0_i32, %c0_i32_0 : i32, i32
  }
  func.func @transform_7(%arg0: i32) -> (i32, i32) {
    %c0_i32 = arith.constant 0 : i32
    %c0_i32_0 = arith.constant 0 : i32
    return %arg0, %c0_i32 : i32, i32
  }
}

</mosaic_0001>

<bundles_post_ra>
// kernel: vae_encoder_forward.1
= control target key start
LH: loop header
LB: loop body
LE: loop exit
PB: predicated region body
PF: predicated region fallthrough
CT: control target
= control target key end

     0   :  { %12 = vsyncpa [#allocation3], 0  ;;  %s1451_s0 = inlined_call_operand.vmem [shape: f32[2,1024], index: 0, kind: input, shape index: {}]   ;;  %s1452_s1 = inlined_call_operand.hbm [shape: bf16[1024,256], index: 1, kind: input, shape index: {}]   ;;  %s1453_s2 = inlined_call_operand.vmem [shape: f32[1,256], index: 2, kind: input, shape index: {}]   ;;  %s1454_s3 = inlined_call_operand.vmem [shape: bf16[256,128], index: 3, kind: input, shape index: {}]   ;;  %s1455_s4 = inlined_call_operand.vmem [shape: f32[1,128], index: 4, kind: input, shape index: {}]   ;;  %s1456_s5 = inlined_call_operand.hbm [shape: bf16[128,128], index: 5, kind: input, shape index: {}]   ;;  %s1457_s6 = inlined_call_operand.vmem [shape: f32[1,128], index: 6, kind: input, shape index: {}]   ;;  %s1458_s7 = inlined_call_operand.vmem [shape: f32[2,128], index: 7, kind: output, shape index: {}]  }
   0x1   :  { %13 = vsyncpa [#allocation5], 0  ;;  %s1302_s24 = smov [#allocation2]  }
   0x2   :  { %s21_s25 = sshll.u32 %s1302_s24, 4  ;;  %s22_s25 = int_to_ptr.vmem [resolvable:$true] %s21_s25 }
   0x3   :  { %s1266_s26 = scalar_lea.vmem %s22_s25, 16384  ;;  %p1271_p1 = scmp.lt.s32.totalorder %s22_s25, %s22_s25 }
   0x4   :  { %p1267_p0 = scmp.ne.s32.totalorder %s22_s25, %s1266_s26  ;;  %p1272_p2 = scmp.lt.s32.totalorder %s1266_s26, %s1266_s26 }
   0x6   :  { %p1273_p3 = por %p1272_p2, %p1271_p1 }
   0x8   :  { %p1274_p4 = pnand %p1273_p3, %p1267_p0 }
   0xa   :  { %1277 = shalt.err (!%p1274_p4)
}
   0xb   :  { %s1303_s27 = smov 128   ;;  %s1304_s28 = smov 8  }
   0xc   :  { %27 = dma.hbm_to_vmem [thread:$0]  %s1452_s1, 16384, %s22_s25, [#allocation3], %s1303_s27, %s1303_s27, %s1304_s28  }
   0xd   :  { %s1305_s8 = smov [#allocation4]  }
   0xe   :  { %s39_s9 = sshll.u32 %s1305_s8, 4  ;;  %s40_s9 = int_to_ptr.vmem [resolvable:$true] %s39_s9 }
   0xf   :  { %s1286_s10 = scalar_lea.vmem %s40_s9, 1024  ;;  %p1291_p6 = scmp.lt.s32.totalorder %s40_s9, %s40_s9 }
  0x10   :  { %p1287_p5 = scmp.ne.s32.totalorder %s40_s9, %s1286_s10  ;;  %p1292_p7 = scmp.lt.s32.totalorder %s1286_s10, %s1286_s10 }
  0x12   :  { %p1293_p8 = por %p1292_p7, %p1291_p6 }
  0x14   :  { %p1294_p9 = pnand %p1293_p8, %p1287_p5 }
  0x16   :  { %1297 = shalt.err (!%p1294_p9)
}
  0x17   :  { %s1306_s11 = smov 64   ;;  %s1307_s12 = smov 4  }
  0x18   :  { %45 = dma.hbm_to_vmem [thread:$0]  %s1456_s5, 1024, %s40_s9, [#allocation5], %s1306_s11, %s1306_s11, %s1307_s12  }
  0x19   :  { %1298 = dma.done.wait [#allocation3], 16384  }
  0x1a   :  { %1299 = vsyncadd [#allocation3], 4294950912 }
  0x1b   :  { %1300 = dma.done.wait [#allocation5], 1024  }
  0x1c   :  { %1301 = vsyncadd [#allocation5], 4294966272  ;;  %v71_v0 = vld [vmem:[#allocation2 + $0x78] sm:$0xff]  ;;  %v70_v2 = vld [vmem:[#allocation2 + $0x70] sm:$0xff]  ;;  %vm1310_vm0 = vmmov 0  }
  0x1d   :  { %v103_v1 = vld [vmem:[#allocation2 + $0x178] sm:$0xff]  ;;  %v215_v3 = vunpack.c.h.bf16 %v71_v0  ;;  %v214_v5 = vunpack.c.l.bf16 %v71_v0  ;;  %v102_v7 = vld [vmem:[#allocation2 + $0x170] sm:$0xff]  ;;  %v69_v8 = vld [vmem:[#allocation2 + $0x68] sm:$0xff]  ;;  %v213_v10 = vunpack.c.h.bf16 %v70_v2  ;;  %v212_v12 = vunpack.c.l.bf16 %v70_v2 }
  0x1e   :  { %v279_v4 = vunpack.c.h.bf16 %v103_v1  ;;  %v278_v6 = vunpack.c.l.bf16 %v103_v1  ;;  %v101_v9 = vld [vmem:[#allocation2 + $0x168] sm:$0xff]  ;;  %v277_v11 = vunpack.c.h.bf16 %v102_v7  ;;  %v276_v13 = vunpack.c.l.bf16 %v102_v7  ;;  %v68_v14 = vld [vmem:[#allocation2 + $0x60] sm:$0xff]  ;;  %v67_v20 = vld [vmem:[#allocation2 + $0x58] sm:$0xff] }
  0x1f   :  { %v100_v15 = vld [vmem:[#allocation2 + $0x160] sm:$0xff]  ;;  %496 = vmatprep.subr.mxu0 %v215_v3  ;;  %v211_v16 = vunpack.c.h.bf16 %v69_v8  ;;  %v275_v17 = vunpack.c.h.bf16 %v101_v9  ;;  %v210_v18 = vunpack.c.l.bf16 %v69_v8  ;;  %v274_v19 = vunpack.c.l.bf16 %v101_v9  ;;  %v99_v21 = vld [vmem:[#allocation2 + $0x158] sm:$0xff]  ;;  %v66_v26 = vld [vmem:[#allocation2 + $0x50] sm:$0xff] }
  0x20   :  { %567 = vmatprep.subr.mxu1 %v279_v4  ;;  %497 = vmatpush1.msra.mxu0 %v214_v5  ;;  %v209_v22 = vunpack.c.h.bf16 %v68_v14  ;;  %v273_v23 = vunpack.c.h.bf16 %v100_v15  ;;  %v208_v24 = vunpack.c.l.bf16 %v68_v14  ;;  %v272_v25 = vunpack.c.l.bf16 %v100_v15  ;;  %v98_v27 = vld [vmem:[#allocation2 + $0x150] sm:$0xff]  ;;  %v65_v32 = vld [vmem:[#allocation2 + $0x48] sm:$0xff]  ;;  %v64_v38 = vld [vmem:[#allocation2 + $0x40] sm:$0xff] }
  0x21   :  { %568 = vmatpush1.msra.mxu1 %v278_v6  ;;  %498 = vmatprep.subr.mxu0 %v213_v10  ;;  %v207_v28 = vunpack.c.h.bf16 %v67_v20  ;;  %v271_v29 = vunpack.c.h.bf16 %v99_v21  ;;  %v206_v30 = vunpack.c.l.bf16 %v67_v20  ;;  %v270_v31 = vunpack.c.l.bf16 %v99_v21  ;;  %v97_v33 = vld [vmem:[#allocation2 + $0x148] sm:$0xff]  ;;  %v96_v39 = vld [vmem:[#allocation2 + $0x140] sm:$0xff]  ;;  %v63_v44 = vld [vmem:[#allocation2 + $0x38] sm:$0xff] }
  0x22   :  { %569 = vmatprep.subr.mxu1 %v277_v11  ;;  %499 = vmatpush1.msra.mxu0 %v212_v12  ;;  %v205_v34 = vunpack.c.h.bf16 %v66_v26  ;;  %v269_v35 = vunpack.c.h.bf16 %v98_v27  ;;  %v204_v36 = vunpack.c.l.bf16 %v66_v26  ;;  %v268_v37 = vunpack.c.l.bf16 %v98_v27  ;;  %v95_v45 = vld [vmem:[#allocation2 + $0x138] sm:$0xff]  ;;  %v62_v50 = vld [vmem:[#allocation2 + $0x30] sm:$0xff]  ;;  %v61_v56 = vld [vmem:[#allocation2 + $0x28] sm:$0xff] }
  0x23   :  { %570 = vmatpush1.msra.mxu1 %v276_v13  ;;  %500 = vmatprep.subr.mxu0 %v211_v16  ;;  %v203_v40 = vunpack.c.h.bf16 %v65_v32  ;;  %v267_v41 = vunpack.c.h.bf16 %v97_v33  ;;  %v202_v42 = vunpack.c.l.bf16 %v65_v32  ;;  %v266_v43 = vunpack.c.l.bf16 %v97_v33  ;;  %v94_v51 = vld [vmem:[#allocation2 + $0x130] sm:$0xff]  ;;  %v93_v57 = vld [vmem:[#allocation2 + $0x128] sm:$0xff]  ;;  %v60_v62 = vld [vmem:[#allocation2 + $0x20] sm:$0xff] }
  0x24   :  { %571 = vmatprep.subr.mxu1 %v275_v17  ;;  %501 = vmatpush1.msra.mxu0 %v210_v18  ;;  %v201_v46 = vunpack.c.h.bf16 %v64_v38  ;;  %v265_v47 = vunpack.c.h.bf16 %v96_v39  ;;  %v200_v48 = vunpack.c.l.bf16 %v64_v38  ;;  %v264_v49 = vunpack.c.l.bf16 %v96_v39  ;;  %v92_v63 = vld [vmem:[#allocation2 + $0x120] sm:$0xff]  ;;  %v59_v4 = vld [vmem:[#allocation2 + $0x18] sm:$0xff]  ;;  %v58_v10 = vld [vmem:[#allocation2 + $0x10] sm:$0xff] }
  0x25   :  { %572 = vmatpush1.msra.mxu1 %v274_v19  ;;  %502 = vmatprep.subr.mxu0 %v209_v22  ;;  %v199_v52 = vunpack.c.h.bf16 %v63_v44  ;;  %v263_v53 = vunpack.c.h.bf16 %v95_v45  ;;  %v198_v54 = vunpack.c.l.bf16 %v63_v44  ;;  %v262_v55 = vunpack.c.l.bf16 %v95_v45  ;;  %v91_v5 = vld [vmem:[#allocation2 + $0x118] sm:$0xff]  ;;  %v90_v11 = vld [vmem:[#allocation2 + $0x110] sm:$0xff]  ;;  %v57_v16 = vld [vmem:[#allocation2 + $0x8] sm:$0xff] }
  0x26   :  { %573 = vmatprep.subr.mxu1 %v273_v23  ;;  %503 = vmatpush1.msra.mxu0 %v208_v24  ;;  %v197_v58 = vunpack.c.h.bf16 %v62_v50  ;;  %v261_v59 = vunpack.c.h.bf16 %v94_v51  ;;  %v196_v60 = vunpack.c.l.bf16 %v62_v50  ;;  %v260_v61 = vunpack.c.l.bf16 %v94_v51  ;;  %v89_v17 = vld [vmem:[#allocation2 + $0x108] sm:$0xff]  ;;  %v56_v22 = vld [vmem:[#allocation2] sm:$0xff] }
  0x27   :  { %574 = vmatpush1.msra.mxu1 %v272_v25  ;;  %504 = vmatprep.subr.mxu0 %v207_v28  ;;  %v195_v0 = vunpack.c.h.bf16 %v61_v56  ;;  %v259_v1 = vunpack.c.h.bf16 %v93_v57  ;;  %v194_v2 = vunpack.c.l.bf16 %v61_v56  ;;  %v258_v3 = vunpack.c.l.bf16 %v93_v57  ;;  %v88_v23 = vld [vmem:[#allocation2 + $0x100] sm:$0xff]  ;;  %v87_v28 = vld [vmem:[#allocation2 + $0xf8] sm:$0xff] }
  0x28   :  { %575 = vmatprep.subr.mxu1 %v271_v29  ;;  %505 = vmatpush1.msra.mxu0 %v206_v30  ;;  %v193_v6 = vunpack.c.h.bf16 %v60_v62  ;;  %v257_v7 = vunpack.c.h.bf16 %v92_v63  ;;  %v192_v8 = vunpack.c.l.bf16 %v60_v62  ;;  %v256_v9 = vunpack.c.l.bf16 %v92_v63  ;;  %v119_v29 = vld [vmem:[#allocation2 + $0x1f8] sm:$0xff] }
  0x29   :  { %576 = vmatpush1.msra.mxu1 %v270_v31  ;;  %506 = vmatprep.subr.mxu0 %v205_v34  ;;  %v191_v12 = vunpack.c.h.bf16 %v59_v4  ;;  %v255_v13 = vunpack.c.h.bf16 %v91_v5  ;;  %v190_v14 = vunpack.c.l.bf16 %v59_v4  ;;  %v254_v15 = vunpack.c.l.bf16 %v91_v5  ;;  %v86_v34 = vld [vmem:[#allocation2 + $0xf0] sm:$0xff] }
  0x2a   :  { %577 = vmatprep.subr.mxu1 %v269_v35  ;;  %507 = vmatpush1.msra.mxu0 %v204_v36  ;;  %v189_v18 = vunpack.c.h.bf16 %v58_v10  ;;  %v253_v19 = vunpack.c.h.bf16 %v90_v11  ;;  %v188_v20 = vunpack.c.l.bf16 %v58_v10  ;;  %v252_v21 = vunpack.c.l.bf16 %v90_v11  ;;  %v118_v35 = vld [vmem:[#allocation2 + $0x1f0] sm:$0xff] }
  0x2b   :  { %578 = vmatpush1.msra.mxu1 %v268_v37  ;;  %508 = vmatprep.subr.mxu0 %v203_v40  ;;  %v187_v24 = vunpack.c.h.bf16 %v57_v16  ;;  %v251_v25 = vunpack.c.h.bf16 %v89_v17  ;;  %v186_v26 = vunpack.c.l.bf16 %v57_v16  ;;  %v250_v27 = vunpack.c.l.bf16 %v89_v17  ;;  %v85_v40 = vld [vmem:[#allocation2 + $0xe8] sm:$0xff] }
  0x2c   :  { %579 = vmatprep.subr.mxu1 %v267_v41  ;;  %509 = vmatpush1.msra.mxu0 %v202_v42  ;;  %v185_v30 = vunpack.c.h.bf16 %v56_v22  ;;  %v249_v31 = vunpack.c.h.bf16 %v88_v23  ;;  %v184_v32 = vunpack.c.l.bf16 %v56_v22  ;;  %v248_v33 = vunpack.c.l.bf16 %v88_v23  ;;  %v117_v41 = vld [vmem:[#allocation2 + $0x1e8] sm:$0xff] }
  0x2d   :  { %580 = vmatpush1.msra.mxu1 %v266_v43  ;;  %510 = vmatprep.subr.mxu0 %v201_v46  ;;  %v247_v36 = vunpack.c.h.bf16 %v87_v28  ;;  %v311_v37 = vunpack.c.h.bf16 %v119_v29  ;;  %v246_v38 = vunpack.c.l.bf16 %v87_v28  ;;  %v310_v39 = vunpack.c.l.bf16 %v119_v29  ;;  %v84_v46 = vld [vmem:[#allocation2 + $0xe0] sm:$0xff]  ;;  %v109_v28 = vld [vmem:[#allocation2 + $0x1a8] sm:$0xff] }
  0x2e   :  { %581 = vmatprep.subr.mxu1 %v265_v47  ;;  %511 = vmatpush1.msra.mxu0 %v200_v48  ;;  %v245_v42 = vunpack.c.h.bf16 %v86_v34  ;;  %v309_v43 = vunpack.c.h.bf16 %v118_v35  ;;  %v244_v44 = vunpack.c.l.bf16 %v86_v34  ;;  %v308_v45 = vunpack.c.l.bf16 %v118_v35  ;;  %v116_v47 = vld [vmem:[#allocation2 + $0x1e0] sm:$0xff] }
  0x2f   :  { %582 = vmatpush1.msra.mxu1 %v264_v49  ;;  %512 = vmatprep.subr.mxu0 %v199_v52  ;;  %v243_v48 = vunpack.c.h.bf16 %v85_v40  ;;  %v307_v49 = vunpack.c.h.bf16 %v117_v41  ;;  %v242_v50 = vunpack.c.l.bf16 %v85_v40  ;;  %v306_v51 = vunpack.c.l.bf16 %v117_v41  ;;  %v83_v52 = vld [vmem:[#allocation2 + $0xd8] sm:$0xff]  ;;  %v108_v34 = vld [vmem:[#allocation2 + $0x1a0] sm:$0xff] }
  0x30   :  { %583 = vmatprep.subr.mxu1 %v263_v53  ;;  %513 = vmatpush1.msra.mxu0 %v198_v54  ;;  %v115_v53 = vld [vmem:[#allocation2 + $0x1d8] sm:$0xff]  ;;  %v241_v54 = vunpack.c.h.bf16 %v84_v46  ;;  %v240_v56 = vunpack.c.l.bf16 %v84_v46  ;;  %v304_v57 = vunpack.c.l.bf16 %v116_v47  ;;  %v238_v62 = vunpack.c.l.bf16 %v83_v52 }
  0x31   :  { %584 = vmatpush1.msra.mxu1 %v262_v55  ;;  %514 = vmatprep.subr.mxu0 %v197_v58  ;;  %v305_v55 = vunpack.c.h.bf16 %v116_v47  ;;  %v82_v58 = vld [vmem:[#allocation2 + $0xd0] sm:$0xff]  ;;  %v302_v63 = vunpack.c.l.bf16 %v115_v53  ;;  %v290_v40 = vunpack.c.l.bf16 %v109_v28  ;;  %v75_v41 = vld [vmem:[#allocation2 + $0x98] sm:$0xff]  ;;  %v288_v47 = vunpack.c.l.bf16 %v108_v34 }
  0x32   :  { %585 = vmatprep.subr.mxu1 %v261_v59  ;;  %515 = vmatpush1.msra.mxu0 %v196_v60  ;;  %v114_v59 = vld [vmem:[#allocation2 + $0x1d0] sm:$0xff]  ;;  %v239_v60 = vunpack.c.h.bf16 %v83_v52  ;;  %v236_v4 = vunpack.c.l.bf16 %v82_v58 }
  0x33   :  { %586 = vmatpush1.msra.mxu1 %v260_v61  ;;  %516 = vmatprep.subr.mxu0 %v195_v0  ;;  %v303_v61 = vunpack.c.h.bf16 %v115_v53  ;;  %v81_v0 = vld [vmem:[#allocation2 + $0xc8] sm:$0xff]  ;;  %v300_v5 = vunpack.c.l.bf16 %v114_v59  ;;  %v222_v53 = vunpack.c.l.bf16 %v75_v41 }
  0x34   :  { %587 = vmatprep.subr.mxu1 %v259_v1  ;;  %517 = vmatpush1.msra.mxu0 %v194_v2  ;;  %v113_v1 = vld [vmem:[#allocation2 + $0x1c8] sm:$0xff]  ;;  %v237_v2 = vunpack.c.h.bf16 %v82_v58  ;;  %v234_v10 = vunpack.c.l.bf16 %v81_v0 }
  0x35   :  { %588 = vmatpush1.msra.mxu1 %v258_v3  ;;  %518 = vmatprep.subr.mxu0 %v193_v6  ;;  %v301_v3 = vunpack.c.h.bf16 %v114_v59  ;;  %v80_v6 = vld [vmem:[#allocation2 + $0xc0] sm:$0xff]  ;;  %v298_v11 = vunpack.c.l.bf16 %v113_v1 }
  0x36   :  { %589 = vmatprep.subr.mxu1 %v257_v7  ;;  %519 = vmatpush1.msra.mxu0 %v192_v8  ;;  %v112_v7 = vld [vmem:[#allocation2 + $0x1c0] sm:$0xff]  ;;  %v235_v8 = vunpack.c.h.bf16 %v81_v0  ;;  %v232_v16 = vunpack.c.l.bf16 %v80_v6 }
  0x37   :  { %590 = vmatpush1.msra.mxu1 %v256_v9  ;;  %520 = vmatprep.subr.mxu0 %v191_v12  ;;  %v299_v9 = vunpack.c.h.bf16 %v113_v1  ;;  %v79_v12 = vld [vmem:[#allocation2 + $0xb8] sm:$0xff]  ;;  %v296_v17 = vunpack.c.l.bf16 %v112_v7 }
  0x38   :  { %591 = vmatprep.subr.mxu1 %v255_v13  ;;  %521 = vmatpush1.msra.mxu0 %v190_v14  ;;  %v111_v13 = vld [vmem:[#allocation2 + $0x1b8] sm:$0xff]  ;;  %v233_v14 = vunpack.c.h.bf16 %v80_v6  ;;  %v231_v23 = vunpack.c.h.bf16 %v79_v12 }
  0x39   :  { %592 = vmatpush1.msra.mxu1 %v254_v15  ;;  %522 = vmatprep.subr.mxu0 %v189_v18  ;;  %v297_v15 = vunpack.c.h.bf16 %v112_v7  ;;  %v78_v18 = vld [vmem:[#allocation2 + $0xb0] sm:$0xff] }
  0x3a   :  { %593 = vmatprep.subr.mxu1 %v253_v19  ;;  %523 = vmatpush1.msra.mxu0 %v188_v20  ;;  %v110_v19 = vld [vmem:[#allocation2 + $0x1b0] sm:$0xff]  ;;  %v442_v20 = vlaneseq  ;;  %v229_v29 = vunpack.c.h.bf16 %v78_v18 }
  0x3b   :  { %594 = vmatpush1.msra.mxu1 %v252_v21  ;;  %524 = vmatprep.subr.mxu0 %v187_v24  ;;  %v1308_v21 = vmov 1983009808   ;;  %v295_v24 = vunpack.c.h.bf16 %v111_v13 }
  0x3c   :  { %595 = vmatprep.subr.mxu1 %v251_v25  ;;  %525 = vmatpush1.msra.mxu0 %v186_v26  ;;  %v456_v22 = vunpack.c.l.s4 %v1308_v21  ;;  %v230_v25 = vunpack.c.l.bf16 %v79_v12  ;;  %v294_v26 = vunpack.c.l.bf16 %v111_v13  ;;  %v1357_v35 = vshrl.u32 %v442_v20, 7  ;;  %v133_v20 = vld [vmem:[#allocation2 + $0x268] sm:$0xff] }
  0x3d   :  { %596 = vmatpush1.msra.mxu1 %v250_v27  ;;  %526 = vmatprep.subr.mxu0 %v185_v30  ;;  %v77_v27 = vld [vmem:[#allocation2 + $0xa8] sm:$0xff]  ;;  %v293_v30 = vunpack.c.h.bf16 %v110_v19 }
  0x3e   :  { %597 = vmatprep.subr.mxu1 %v249_v31  ;;  %527 = vmatpush1.msra.mxu0 %v184_v32  ;;  %v228_v31 = vunpack.c.l.bf16 %v78_v18  ;;  %v292_v32 = vunpack.c.l.bf16 %v110_v19  ;;  %v165_v21 = vld [vmem:[#allocation2 + $0x368] sm:$0xff] }
  0x3f   :  { %598 = vmatpush1.msra.mxu1 %v248_v33  ;;  %528 = vmatprep.subr.mxu0 %v247_v36  ;;  %v76_v33 = vld [vmem:[#allocation2 + $0xa0] sm:$0xff]  ;;  %v457_v36 = vunpack.c.0.s8 %v456_v22 }
  0x40   :  { %599 = vmatprep.subr.mxu1 %v311_v37  ;;  %529 = vmatpush2.msra.mxu0 %v246_v38  ;;  %v227_v37 = vunpack.c.h.bf16 %v77_v27  ;;  %v291_v38 = vunpack.c.h.bf16 %v109_v28  ;;  %v224_v46 = vunpack.c.l.bf16 %v76_v33  ;;  %v339_v28 = vunpack.c.h.bf16 %v133_v20 }
  0x41   :  { %600 = vmatpush2.msra.mxu1 %v310_v39  ;;  %530 = vmatprep.subr.mxu0 %v245_v42  ;;  %v226_v39 = vunpack.c.l.bf16 %v77_v27  ;;  %v107_v42 = vld [vmem:[#allocation2 + $0x198] sm:$0xff]  ;;  %v164_v27 = vld [vmem:[#allocation2 + $0x360] sm:$0xff] }
  0x42   :  { %601 = vmatprep.subr.mxu1 %v309_v43  ;;  %531 = vmatpush2.msra.mxu0 %v244_v44  ;;  %v225_v43 = vunpack.c.h.bf16 %v76_v33  ;;  %v289_v44 = vunpack.c.h.bf16 %v108_v34  ;;  %v287_v52 = vunpack.c.h.bf16 %v107_v42  ;;  %v163_v33 = vld [vmem:[#allocation2 + $0x358] sm:$0xff] }
  0x43   :  { %602 = vmatpush2.msra.mxu1 %v308_v45  ;;  %532 = vmatprep.subr.mxu0 %v243_v48  ;;  %v54_v45 = vld [vmem:[%s1451_s0] sm:$0xff]  ;;  %v74_v48 = vld [vmem:[#allocation2 + $0x90] sm:$0xff] }
  0x44   :  { %603 = vmatprep.subr.mxu1 %v307_v49  ;;  %533 = vmatpush2.msra.mxu0 %v242_v50  ;;  %v106_v49 = vld [vmem:[#allocation2 + $0x190] sm:$0xff]  ;;  %v1363_v50 = vsub.s32 %v457_v36, %v1357_v35  ;;  %v221_v58 = vunpack.c.h.bf16 %v74_v48  ;;  %v401_v36 = vunpack.c.h.bf16 %v164_v27 }
  0x45   :  { %604 = vmatpush2.msra.mxu1 %v306_v51  ;;  %534 = vmatprep.subr.mxu0 %v241_v54  ;;  %v223_v51 = vunpack.c.h.bf16 %v75_v41  ;;  %v286_v54 = vunpack.c.l.bf16 %v107_v42  ;;  %v285_v59 = vunpack.c.h.bf16 %v106_v49  ;;  %v399_v42 = vunpack.c.h.bf16 %v163_v33 }
  0x46   :  { %605 = vmatprep.subr.mxu1 %v305_v55  ;;  %535 = vmatpush2.msra.mxu0 %v240_v56  ;;  %v73_v55 = vld [vmem:[#allocation2 + $0x88] sm:$0xff]  ;;  %v461_v0 = vrot.slane %v54_v45, %v1363_v50 }
  0x47   :  { %606 = vmatpush2.msra.mxu1 %v304_v57  ;;  %536 = vmatprep.subr.mxu0 %v239_v60  ;;  %v105_v56 = vld [vmem:[#allocation2 + $0x188] sm:$0xff]  ;;  %v454_v57 = vcombine.high %v54_v45, %v54_v45  ;;  %v220_v60 = vunpack.c.l.bf16 %v74_v48  ;;  %v219_v1 = vunpack.c.h.bf16 %v73_v55 }
  0x48   :  { %607 = vmatprep.subr.mxu1 %v303_v61  ;;  %537 = vmatpush2.msra.mxu0 %v238_v62  ;;  %v284_v61 = vunpack.c.l.bf16 %v106_v49  ;;  %v72_v62 = vld [vmem:[#allocation2 + $0x80] sm:$0xff]  ;;  %v129_v45 = vld [vmem:[#allocation2 + $0x248] sm:$0xff] }
  0x49   :  { %608 = vmatpush2.msra.mxu1 %v302_v63  ;;  %538 = vmatprep.subr.mxu0 %v237_v2  ;;  %v104_v63 = vld [vmem:[#allocation2 + $0x180] sm:$0xff]  ;;  %v283_v2 = vunpack.c.h.bf16 %v105_v56  ;;  %v217_v6 = vunpack.c.h.bf16 %v72_v62 }
  0x4a   :  { %609 = vmatprep.subr.mxu1 %v301_v3  ;;  %539 = vmatpush2.msra.mxu0 %v236_v4  ;;  %v218_v3 = vunpack.c.l.bf16 %v73_v55  ;;  %v282_v4 = vunpack.c.l.bf16 %v105_v56  ;;  %v281_v7 = vunpack.c.h.bf16 %v104_v63  ;;  %v280_v12 = vunpack.c.l.bf16 %v104_v63 }
  0x4b   :  { %610 = vmatpush2.msra.mxu1 %v300_v5  ;;  %540 = vmatprep.subr.mxu0 %v235_v8  ;;  %v468_v5 = vrot.slane %v454_v57, %v1363_v50  ;;  %v135_v8 = vld [vmem:[#allocation2 + $0x278] sm:$0xff]  ;;  %v330_v56 = vunpack.c.l.bf16 %v129_v45 }
  0x4c   :  { %611 = vmatprep.subr.mxu1 %v299_v9  ;;  %541 = vmatpush2.msra.mxu0 %v234_v10  ;;  %v216_v9 = vunpack.c.l.bf16 %v72_v62  ;;  %v469_v10 = vcombine.high %v461_v0, %v461_v0  ;;  %v342_v18 = vunpack.c.l.bf16 %v135_v8 }
  0x4d   :  { %612 = vmatpush2.msra.mxu1 %v298_v11  ;;  %542 = vmatprep.subr.mxu0 %v233_v14  ;;  %v167_v11 = vld [vmem:[#allocation2 + $0x378] sm:$0xff]  ;;  %v470_v13 = vcombine.high %v468_v5, %v468_v5  ;;  %v343_v14 = vunpack.c.h.bf16 %v135_v8 }
  0x4e   :  { %613 = vmatprep.subr.mxu1 %v297_v15  ;;  %543 = vmatpush2.msra.mxu0 %v232_v16  ;;  %v134_v15 = vld [vmem:[#allocation2 + $0x270] sm:$0xff]  ;;  %v406_v19 = vunpack.c.l.bf16 %v167_v11 }
  0x4f   :  { %614 = vmatpush2.msra.mxu1 %v296_v17  ;;  %544 = vmatprep.subr.mxu0 %v231_v23  ;;  %v166_v16 = vld [vmem:[#allocation2 + $0x370] sm:$0xff]  ;;  %v407_v17 = vunpack.c.h.bf16 %v167_v11  ;;  %v341_v22 = vunpack.c.h.bf16 %v134_v15 }
  0x50   :  { %615 = vmatprep.subr.mxu1 %v295_v24  ;;  %545 = vmatpush2.msra.mxu0 %v230_v25  ;;  %v405_v23 = vunpack.c.h.bf16 %v166_v16  ;;  %v340_v24 = vunpack.c.l.bf16 %v134_v15  ;;  %v404_v25 = vunpack.c.l.bf16 %v166_v16 }
  0x51   :  { %616 = vmatpush2.msra.mxu1 %v294_v26  ;;  %546 = vmatprep.subr.mxu0 %v229_v29  ;;  %v132_v26 = vld [vmem:[#allocation2 + $0x260] sm:$0xff]  ;;  %v403_v29 = vunpack.c.h.bf16 %v165_v21 }
  0x52   :  { %617 = vmatprep.subr.mxu1 %v293_v30  ;;  %547 = vmatpush2.msra.mxu0 %v228_v31  ;;  %v338_v30 = vunpack.c.l.bf16 %v133_v20  ;;  %v402_v31 = vunpack.c.l.bf16 %v165_v21  ;;  %v337_v34 = vunpack.c.h.bf16 %v132_v26 }
  0x53   :  { %618 = vmatpush2.msra.mxu1 %v292_v32  ;;  %548 = vmatprep.subr.mxu0 %v227_v37  ;;  %v131_v32 = vld [vmem:[#allocation2 + $0x258] sm:$0xff]  ;;  %v336_v37 = vunpack.c.l.bf16 %v132_v26 }
  0x54   :  { %619 = vmatprep.subr.mxu1 %v291_v38  ;;  %549 = vmatpush2.msra.mxu0 %v226_v39  ;;  %v400_v38 = vunpack.c.l.bf16 %v164_v27  ;;  %v130_v39 = vld [vmem:[#allocation2 + $0x250] sm:$0xff]  ;;  %v335_v41 = vunpack.c.h.bf16 %v131_v32 }
  0x55   :  { %620 = vmatpush2.msra.mxu1 %v290_v40  ;;  %550 = vmatprep.subr.mxu0 %v225_v43  ;;  %v162_v40 = vld [vmem:[#allocation2 + $0x350] sm:$0xff]  ;;  %v334_v43 = vunpack.c.l.bf16 %v131_v32  ;;  %v332_v49 = vunpack.c.l.bf16 %v130_v39 }
  0x56   :  { %621 = vmatprep.subr.mxu1 %v289_v44  ;;  %551 = vmatpush2.msra.mxu0 %v224_v46  ;;  %v398_v44 = vunpack.c.l.bf16 %v163_v33  ;;  %v161_v46 = vld [vmem:[#allocation2 + $0x348] sm:$0xff]  ;;  %v397_v48 = vunpack.c.h.bf16 %v162_v40 }
  0x57   :  { %622 = vmatpush2.msra.mxu1 %v288_v47  ;;  %552 = vmatprep.subr.mxu0 %v223_v51  ;;  %v333_v47 = vunpack.c.h.bf16 %v130_v39  ;;  %v396_v51 = vunpack.c.l.bf16 %v162_v40  ;;  %v395_v55 = vunpack.c.h.bf16 %v161_v46  ;;  %v394_v57 = vunpack.c.l.bf16 %v161_v46 }
  0x58   :  { %623 = vmatprep.subr.mxu1 %v287_v52  ;;  %553 = vmatpush2.msra.mxu0 %v222_v53  ;;  %v128_v52 = vld [vmem:[#allocation2 + $0x240] sm:$0xff] }
  0x59   :  { %624 = vmatpush2.msra.mxu1 %v286_v54  ;;  %554 = vmatprep.subr.mxu0 %v221_v58  ;;  %v160_v53 = vld [vmem:[#allocation2 + $0x340] sm:$0xff]  ;;  %v331_v54 = vunpack.c.h.bf16 %v129_v45  ;;  %v127_v58 = vld [vmem:[#allocation2 + $0x238] sm:$0xff]  ;;  %v328_v62 = vunpack.c.l.bf16 %v128_v52 }
  0x5a   :  { %625 = vmatprep.subr.mxu1 %v285_v59  ;;  %555 = vmatpush2.msra.mxu0 %v220_v60  ;;  %v159_v59 = vld [vmem:[#allocation2 + $0x338] sm:$0xff]  ;;  %v329_v60 = vunpack.c.h.bf16 %v128_v52  ;;  %v392_v63 = vunpack.c.l.bf16 %v160_v53 }
  0x5b   :  { %626 = vmatpush2.msra.mxu1 %v284_v61  ;;  %556 = vmatprep.subr.mxu0 %v219_v1  ;;  %v393_v61 = vunpack.c.h.bf16 %v160_v53  ;;  %v158_v1 = vld [vmem:[#allocation2 + $0x330] sm:$0xff] }
  0x5c   :  { %627 = vmatprep.subr.mxu1 %v283_v2  ;;  %557 = vmatpush2.msra.mxu0 %v218_v3  ;;  %v327_v2 = vunpack.c.h.bf16 %v127_v58  ;;  %v391_v3 = vunpack.c.h.bf16 %v159_v59  ;;  %v388_v11 = vunpack.c.l.bf16 %v158_v1 }
  0x5d   :  { %628 = vmatpush2.msra.mxu1 %v282_v4  ;;  %558 = vmatprep.subr.mxu0 %v217_v6  ;;  %v326_v4 = vunpack.c.l.bf16 %v127_v58  ;;  %v125_v6 = vld [vmem:[#allocation2 + $0x228] sm:$0xff] }
  0x5e   :  { %629 = vmatprep.subr.mxu1 %v281_v7  ;;  %559 = vmatpush2.msra.mxu0 %v216_v9  ;;  %v157_v7 = vld [vmem:[#allocation2 + $0x328] sm:$0xff]  ;;  %v389_v9 = vunpack.c.h.bf16 %v158_v1  ;;  %v322_v16 = vunpack.c.l.bf16 %v125_v6 }
  0x5f   :  { %560 = vmatprep.mubr.f32.mxu0 %v469_v10  ;;  %630 = vmatpush2.msra.mxu1 %v280_v12  ;;  %v124_v12 = vld [vmem:[#allocation2 + $0x220] sm:$0xff]  ;;  %v387_v15 = vunpack.c.h.bf16 %v157_v7 }
  0x60   :  { %561 = vmatmul.mubr.f32.vlgmr.msra.gmra.mxu0 %v461_v0  ;;  %631 = vmatprep.mubr.f32.mxu1 %v470_v13  ;;  %v126_v0 = vld [vmem:[#allocation2 + $0x230] sm:$0xff]  ;;  %v156_v13 = vld [vmem:[#allocation2 + $0x320] sm:$0xff]  ;;  %v321_v20 = vunpack.c.h.bf16 %v124_v12 }
  0x61   :  { %638 = vmatprep.subr.mxu0 %v343_v14  ;;  %709 = vmatprep.subr.mxu1 %v407_v17  ;;  %v325_v8 = vunpack.c.h.bf16 %v126_v0  ;;  %v324_v10 = vunpack.c.l.bf16 %v126_v0  ;;  %v323_v14 = vunpack.c.h.bf16 %v125_v6  ;;  %v386_v17 = vunpack.c.l.bf16 %v157_v7 }
  0x62   :  { %632 = vmatmul.mubr.f32.vlgmr.msra.gmra.mxu1 %v468_v5  ;;  %639 = vmatpush1.msra.mxu0 %v342_v18  ;;  %v390_v5 = vunpack.c.l.bf16 %v159_v59  ;;  %v123_v18 = vld [vmem:[#allocation2 + $0x218] sm:$0xff]  ;;  %v385_v21 = vunpack.c.h.bf16 %v156_v13 }
  0x63   :  { %710 = vmatpush1.msra.mxu1 %v406_v19  ;;  %640 = vmatprep.subr.mxu0 %v341_v22  ;;  %v155_v19 = vld [vmem:[#allocation2 + $0x318] sm:$0xff]  ;;  %v320_v22 = vunpack.c.l.bf16 %v124_v12  ;;  %v319_v26 = vunpack.c.h.bf16 %v123_v18 }
  0x64   :  { %711 = vmatprep.subr.mxu1 %v405_v23  ;;  %641 = vmatpush1.msra.mxu0 %v340_v24  ;;  %v384_v23 = vunpack.c.l.bf16 %v156_v13  ;;  %v122_v24 = vld [vmem:[#allocation2 + $0x210] sm:$0xff]  ;;  %v383_v27 = vunpack.c.h.bf16 %v155_v19 }
  0x65   :  { %712 = vmatpush1.msra.mxu1 %v404_v25  ;;  %642 = vmatprep.subr.mxu0 %v339_v28  ;;  %v154_v25 = vld [vmem:[#allocation2 + $0x310] sm:$0xff]  ;;  %v318_v28 = vunpack.c.l.bf16 %v123_v18  ;;  %v317_v32 = vunpack.c.h.bf16 %v122_v24 }
  0x66   :  { %713 = vmatprep.subr.mxu1 %v403_v29  ;;  %643 = vmatpush1.msra.mxu0 %v338_v30  ;;  %v382_v29 = vunpack.c.l.bf16 %v155_v19  ;;  %v121_v30 = vld [vmem:[#allocation2 + $0x208] sm:$0xff]  ;;  %v381_v33 = vunpack.c.h.bf16 %v154_v25 }
  0x67   :  { %714 = vmatpush1.msra.mxu1 %v402_v31  ;;  %644 = vmatprep.subr.mxu0 %v337_v34  ;;  %v153_v31 = vld [vmem:[#allocation2 + $0x308] sm:$0xff]  ;;  %v316_v34 = vunpack.c.l.bf16 %v122_v24  ;;  %v315_v39 = vunpack.c.h.bf16 %v121_v30 }
  0x68   :  { %715 = vmatprep.subr.mxu1 %v401_v36  ;;  %645 = vmatpush1.msra.mxu0 %v336_v37  ;;  %v380_v36 = vunpack.c.l.bf16 %v154_v25  ;;  %v120_v37 = vld [vmem:[#allocation2 + $0x200] sm:$0xff]  ;;  %v379_v40 = vunpack.c.h.bf16 %v153_v31 }
  0x69   :  { %716 = vmatpush1.msra.mxu1 %v400_v38  ;;  %646 = vmatprep.subr.mxu0 %v335_v41  ;;  %v152_v38 = vld [vmem:[#allocation2 + $0x300] sm:$0xff]  ;;  %v314_v41 = vunpack.c.l.bf16 %v121_v30  ;;  %v313_v45 = vunpack.c.h.bf16 %v120_v37 }
  0x6a   :  { %717 = vmatprep.subr.mxu1 %v399_v42  ;;  %647 = vmatpush1.msra.mxu0 %v334_v43  ;;  %v378_v42 = vunpack.c.l.bf16 %v153_v31  ;;  %v151_v43 = vld [vmem:[#allocation2 + $0x2f8] sm:$0xff]  ;;  %v377_v46 = vunpack.c.h.bf16 %v152_v38 }
  0x6b   :  { %718 = vmatpush1.msra.mxu1 %v398_v44  ;;  %648 = vmatprep.subr.mxu0 %v333_v47  ;;  %v183_v44 = vld [vmem:[#allocation2 + $0x3f8] sm:$0xff]  ;;  %v312_v47 = vunpack.c.l.bf16 %v120_v37  ;;  %v375_v52 = vunpack.c.h.bf16 %v151_v43 }
  0x6c   :  { %719 = vmatprep.subr.mxu1 %v397_v48  ;;  %649 = vmatpush1.msra.mxu0 %v332_v49  ;;  %v376_v48 = vunpack.c.l.bf16 %v152_v38  ;;  %v150_v49 = vld [vmem:[#allocation2 + $0x2f0] sm:$0xff]  ;;  %v439_v53 = vunpack.c.h.bf16 %v183_v44 }
  0x6d   :  { %720 = vmatpush1.msra.mxu1 %v396_v51  ;;  %650 = vmatprep.subr.mxu0 %v331_v54  ;;  %v182_v51 = vld [vmem:[#allocation2 + $0x3f0] sm:$0xff]  ;;  %v374_v54 = vunpack.c.l.bf16 %v151_v43  ;;  %v373_v58 = vunpack.c.h.bf16 %v150_v49 }
  0x6e   :  { %721 = vmatprep.subr.mxu1 %v395_v55  ;;  %651 = vmatpush1.msra.mxu0 %v330_v56  ;;  %v438_v55 = vunpack.c.l.bf16 %v183_v44  ;;  %v149_v56 = vld [vmem:[#allocation2 + $0x2e8] sm:$0xff]  ;;  %v437_v59 = vunpack.c.h.bf16 %v182_v51 }
  0x6f   :  { %722 = vmatpush1.msra.mxu1 %v394_v57  ;;  %652 = vmatprep.subr.mxu0 %v329_v60  ;;  %v181_v57 = vld [vmem:[#allocation2 + $0x3e8] sm:$0xff]  ;;  %v372_v60 = vunpack.c.l.bf16 %v150_v49  ;;  %v371_v0 = vunpack.c.h.bf16 %v149_v56 }
  0x70   :  { %723 = vmatprep.subr.mxu1 %v393_v61  ;;  %653 = vmatpush1.msra.mxu0 %v328_v62  ;;  %v436_v61 = vunpack.c.l.bf16 %v182_v51  ;;  %v148_v62 = vld [vmem:[#allocation2 + $0x2e0] sm:$0xff]  ;;  %v435_v1 = vunpack.c.h.bf16 %v181_v57 }
  0x71   :  { %724 = vmatpush1.msra.mxu1 %v392_v63  ;;  %654 = vmatprep.subr.mxu0 %v327_v2  ;;  %v180_v63 = vld [vmem:[#allocation2 + $0x3e0] sm:$0xff]  ;;  %v370_v2 = vunpack.c.l.bf16 %v149_v56  ;;  %v369_v6 = vunpack.c.h.bf16 %v148_v62  ;;  %v55_v56 = vld [vmem:[%s1451_s0 + $0x8] sm:$0xff] }
  0x72   :  { %725 = vmatprep.subr.mxu1 %v391_v3  ;;  %655 = vmatpush1.msra.mxu0 %v326_v4  ;;  %v434_v3 = vunpack.c.l.bf16 %v181_v57  ;;  %v147_v4 = vld [vmem:[#allocation2 + $0x2d8] sm:$0xff]  ;;  %v433_v7 = vunpack.c.h.bf16 %v180_v63 }
  0x73   :  { %726 = vmatpush1.msra.mxu1 %v390_v5  ;;  %656 = vmatprep.subr.mxu0 %v325_v8  ;;  %v179_v5 = vld [vmem:[#allocation2 + $0x3d8] sm:$0xff]  ;;  %v368_v8 = vunpack.c.l.bf16 %v148_v62  ;;  %v367_v12 = vunpack.c.h.bf16 %v147_v4  ;;  %v170_v62 = vld [vmem:[#allocation2 + $0x390] sm:$0xff] }
  0x74   :  { %727 = vmatprep.subr.mxu1 %v389_v9  ;;  %657 = vmatpush1.msra.mxu0 %v324_v10  ;;  %v432_v9 = vunpack.c.l.bf16 %v180_v63  ;;  %v146_v10 = vld [vmem:[#allocation2 + $0x2d0] sm:$0xff]  ;;  %v431_v13 = vunpack.c.h.bf16 %v179_v5 }
  0x75   :  { %728 = vmatpush1.msra.mxu1 %v388_v11  ;;  %658 = vmatprep.subr.mxu0 %v323_v14  ;;  %v178_v11 = vld [vmem:[#allocation2 + $0x3d0] sm:$0xff]  ;;  %v366_v14 = vunpack.c.l.bf16 %v147_v4  ;;  %v365_v18 = vunpack.c.h.bf16 %v146_v10  ;;  %v137_v4 = vld [vmem:[#allocation2 + $0x288] sm:$0xff] }
  0x76   :  { %729 = vmatprep.subr.mxu1 %v387_v15  ;;  %659 = vmatpush1.msra.mxu0 %v322_v16  ;;  %v430_v15 = vunpack.c.l.bf16 %v179_v5  ;;  %v145_v16 = vld [vmem:[#allocation2 + $0x2c8] sm:$0xff]  ;;  %v429_v19 = vunpack.c.h.bf16 %v178_v11 }
  0x77   :  { %730 = vmatpush1.msra.mxu1 %v386_v17  ;;  %660 = vmatprep.subr.mxu0 %v321_v20  ;;  %v177_v17 = vld [vmem:[#allocation2 + $0x3c8] sm:$0xff]  ;;  %v364_v20 = vunpack.c.l.bf16 %v146_v10  ;;  %v363_v24 = vunpack.c.h.bf16 %v145_v16  ;;  %v136_v10 = vld [vmem:[#allocation2 + $0x280] sm:$0xff] }
  0x78   :  { %731 = vmatprep.subr.mxu1 %v385_v21  ;;  %661 = vmatpush1.msra.mxu0 %v320_v22  ;;  %v428_v21 = vunpack.c.l.bf16 %v178_v11  ;;  %v144_v22 = vld [vmem:[#allocation2 + $0x2c0] sm:$0xff]  ;;  %v427_v25 = vunpack.c.h.bf16 %v177_v17  ;;  %v169_v5 = vld [vmem:[#allocation2 + $0x388] sm:$0xff] }
  0x79   :  { %732 = vmatpush1.msra.mxu1 %v384_v23  ;;  %662 = vmatprep.subr.mxu0 %v319_v26  ;;  %v176_v23 = vld [vmem:[#allocation2 + $0x3c0] sm:$0xff]  ;;  %v362_v26 = vunpack.c.l.bf16 %v145_v16  ;;  %v361_v30 = vunpack.c.h.bf16 %v144_v22  ;;  %v346_v16 = vunpack.c.l.bf16 %v137_v4 }
  0x7a   :  { %733 = vmatprep.subr.mxu1 %v383_v27  ;;  %663 = vmatpush1.msra.mxu0 %v318_v28  ;;  %v426_v27 = vunpack.c.l.bf16 %v177_v17  ;;  %v143_v28 = vld [vmem:[#allocation2 + $0x2b8] sm:$0xff]  ;;  %v425_v31 = vunpack.c.h.bf16 %v176_v23  ;;  %v168_v11 = vld [vmem:[#allocation2 + $0x380] sm:$0xff]  ;;  %v410_v17 = vunpack.c.l.bf16 %v169_v5 }
  0x7b   :  { %734 = vmatpush1.msra.mxu1 %v382_v29  ;;  %664 = vmatprep.subr.mxu0 %v317_v32  ;;  %v175_v29 = vld [vmem:[#allocation2 + $0x3b8] sm:$0xff]  ;;  %v360_v32 = vunpack.c.l.bf16 %v144_v22  ;;  %v359_v37 = vunpack.c.h.bf16 %v143_v28  ;;  %v408_v22 = vunpack.c.l.bf16 %v168_v11 }
  0x7c   :  { %735 = vmatprep.subr.mxu1 %v381_v33  ;;  %665 = vmatpush1.msra.mxu0 %v316_v34  ;;  %v424_v33 = vunpack.c.l.bf16 %v176_v23  ;;  %v142_v34 = vld [vmem:[#allocation2 + $0x2b0] sm:$0xff]  ;;  %v423_v38 = vunpack.c.h.bf16 %v175_v29 }
  0x7d   :  { %736 = vmatpush1.msra.mxu1 %v380_v36  ;;  %666 = vmatprep.subr.mxu0 %v315_v39  ;;  %v174_v36 = vld [vmem:[#allocation2 + $0x3b0] sm:$0xff]  ;;  %v358_v39 = vunpack.c.l.bf16 %v143_v28  ;;  %v357_v43 = vunpack.c.h.bf16 %v142_v34 }
  0x7e   :  { %737 = vmatprep.subr.mxu1 %v379_v40  ;;  %667 = vmatpush1.msra.mxu0 %v314_v41  ;;  %v422_v40 = vunpack.c.l.bf16 %v175_v29  ;;  %v141_v41 = vld [vmem:[#allocation2 + $0x2a8] sm:$0xff]  ;;  %v421_v44 = vunpack.c.h.bf16 %v174_v36  ;;  %v1143_v29 = vld [vmem:[%s1454_s3 + $0x30] sm:$0xff]  }
  0x7f   :  { %738 = vmatpush1.msra.mxu1 %v378_v42  ;;  %668 = vmatprep.subr.mxu0 %v313_v45  ;;  %v173_v42 = vld [vmem:[#allocation2 + $0x3a8] sm:$0xff]  ;;  %v356_v45 = vunpack.c.l.bf16 %v142_v34  ;;  %v355_v49 = vunpack.c.h.bf16 %v141_v41 }
  0x80   :  { %739 = vmatprep.subr.mxu1 %v377_v46  ;;  %669 = vmatpush1.msra.mxu0 %v312_v47  ;;  %v420_v46 = vunpack.c.l.bf16 %v174_v36  ;;  %v140_v47 = vld [vmem:[#allocation2 + $0x2a0] sm:$0xff]  ;;  %v419_v51 = vunpack.c.h.bf16 %v173_v42  ;;  %v1142_v36 = vld [vmem:[%s1454_s3 + $0x28] sm:$0xff]  }
  0x81   :  { %740 = vmatpush1.msra.mxu1 %v376_v48  ;;  %670 = vmatprep.subr.mxu0 %v375_v52  ;;  %v172_v48 = vld [vmem:[#allocation2 + $0x3a0] sm:$0xff]  ;;  %v354_v52 = vunpack.c.l.bf16 %v141_v41  ;;  %v353_v57 = vunpack.c.h.bf16 %v140_v47 }
  0x82   :  { %741 = vmatprep.subr.mxu1 %v439_v53  ;;  %671 = vmatpush2.msra.mxu0 %v374_v54  ;;  %v418_v53 = vunpack.c.l.bf16 %v173_v42  ;;  %v139_v54 = vld [vmem:[#allocation2 + $0x298] sm:$0xff]  ;;  %v1141_v42 = vld [vmem:[%s1454_s3 + $0x20] sm:$0xff]  }
  0x83   :  { %742 = vmatpush2.msra.mxu1 %v438_v55  ;;  %672 = vmatprep.subr.mxu0 %v373_v58  ;;  %v171_v55 = vld [vmem:[#allocation2 + $0x398] sm:$0xff]  ;;  %v417_v58 = vunpack.c.h.bf16 %v172_v48  ;;  %v351_v63 = vunpack.c.h.bf16 %v139_v54 }
  0x84   :  { %743 = vmatprep.subr.mxu1 %v437_v59  ;;  %673 = vmatpush2.msra.mxu0 %v372_v60  ;;  %v352_v59 = vunpack.c.l.bf16 %v140_v47  ;;  %v416_v60 = vunpack.c.l.bf16 %v172_v48  ;;  %v1140_v48 = vld [vmem:[%s1454_s3 + $0x18] sm:$0xff]  }
  0x85   :  { %744 = vmatpush2.msra.mxu1 %v436_v61  ;;  %674 = vmatprep.subr.mxu0 %v371_v0  ;;  %v138_v61 = vld [vmem:[#allocation2 + $0x290] sm:$0xff]  ;;  %v415_v0 = vunpack.c.h.bf16 %v171_v55 }
  0x86   :  { %745 = vmatprep.subr.mxu1 %v435_v1  ;;  %675 = vmatpush2.msra.mxu0 %v370_v2  ;;  %v471_v1 = vcombine.high %v55_v56, %v55_v56  ;;  %v350_v2 = vunpack.c.l.bf16 %v139_v54 }
  0x87   :  { %746 = vmatpush2.msra.mxu1 %v434_v3  ;;  %676 = vmatprep.subr.mxu0 %v369_v6  ;;  %v414_v3 = vunpack.c.l.bf16 %v171_v55  ;;  %v349_v6 = vunpack.c.h.bf16 %v138_v61  ;;  %v1139_v55 = vld [vmem:[%s1454_s3 + $0x10] sm:$0xff]  }
  0x88   :  { %747 = vmatprep.subr.mxu1 %v433_v7  ;;  %677 = vmatpush2.msra.mxu0 %v368_v8  ;;  %v413_v7 = vunpack.c.h.bf16 %v170_v62  ;;  %v348_v8 = vunpack.c.l.bf16 %v138_v61  ;;  %v1146_v61 = vld [vmem:[%s1454_s3 + $0x48] sm:$0xff]  }
  0x89   :  { %748 = vmatpush2.msra.mxu1 %v432_v9  ;;  %678 = vmatprep.subr.mxu0 %v367_v12  ;;  %v412_v9 = vunpack.c.l.bf16 %v170_v62  ;;  %v478_v12 = vrot.slane %v55_v56, %v1363_v50  ;;  %v1056_v56 = vunpack.c.l.bf16 %v1140_v48  ;;  %v1081_v62 = vunpack.c.h.bf16 %v1146_v61 }
  0x8a   :  { %749 = vmatprep.subr.mxu1 %v431_v13  ;;  %679 = vmatpush2.msra.mxu0 %v366_v14  ;;  %v347_v13 = vunpack.c.h.bf16 %v137_v4  ;;  %v411_v14 = vunpack.c.h.bf16 %v169_v5  ;;  %v1043_v5 = vld [vmem:[%s1454_s3] sm:$0xff]  }
  0x8b   :  { %750 = vmatpush2.msra.mxu1 %v430_v15  ;;  %680 = vmatprep.subr.mxu0 %v365_v18  ;;  %v485_v15 = vrot.slane %v471_v1, %v1363_v50  ;;  %v345_v18 = vunpack.c.h.bf16 %v136_v10  ;;  %v1152_v50 = vld [vmem:[%s1454_s3 + $0x78] sm:$0xff]   ;;  %v1080_v1 = vunpack.c.l.bf16 %v1146_v61 }
  0x8c   :  { %751 = vmatprep.subr.mxu1 %v429_v19  ;;  %681 = vmatpush2.msra.mxu0 %v364_v20  ;;  %v409_v19 = vunpack.c.h.bf16 %v168_v11  ;;  %v344_v20 = vunpack.c.l.bf16 %v136_v10  ;;  %v1104_v28 = vunpack.c.l.bf16 %v1152_v50  ;;  %v1158_v10 = vld [vmem:[#allocation4 + $0x30] sm:$0xff]   ;;  %v1309_v11 = vmov 0.0  }
  0x8d   :  { %752 = vmatpush2.msra.mxu1 %v428_v21  ;;  %682 = vmatprep.subr.mxu0 %v363_v24  ;;  %v486_v21 = vcombine.high %v478_v12, %v478_v12  ;;  %v487_v23 = vcombine.high %v485_v15, %v485_v15  ;;  %v1144_v24 = vld [vmem:[%s1454_s3 + $0x38] sm:$0xff]  }
  0x8e   :  { %753 = vmatprep.subr.mxu1 %v427_v25  ;;  %683 = vmatpush2.msra.mxu0 %v362_v26  ;;  %v1151_v25 = vld [vmem:[%s1454_s3 + $0x70] sm:$0xff]   ;;  %v1105_v26 = vunpack.c.h.bf16 %v1152_v50 }
  0x8f   :  { %754 = vmatpush2.msra.mxu1 %v426_v27  ;;  %684 = vmatprep.subr.mxu0 %v361_v30  ;;  %v1073_v27 = vunpack.c.h.bf16 %v1144_v24  ;;  %v1072_v30 = vunpack.c.l.bf16 %v1144_v24  ;;  %v1100_v34 = vunpack.c.l.bf16 %v1151_v25  ;;  %v1154_v50 = vld [vmem:[#allocation4 + $0x10] sm:$0xff]  }
  0x90   :  { %755 = vmatprep.subr.mxu1 %v425_v31  ;;  %685 = vmatpush2.msra.mxu0 %v360_v32  ;;  %v1101_v31 = vunpack.c.h.bf16 %v1151_v25  ;;  %v1069_v32 = vunpack.c.h.bf16 %v1143_v29  ;;  %v1117_v25 = vunpack.c.h.bf16 %v1154_v50 }
  0x91   :  { %756 = vmatpush2.msra.mxu1 %v424_v33  ;;  %686 = vmatprep.subr.mxu0 %v359_v37  ;;  %v1150_v33 = vld [vmem:[%s1454_s3 + $0x68] sm:$0xff]   ;;  %v1068_v37 = vunpack.c.l.bf16 %v1143_v29 }
  0x92   :  { %757 = vmatprep.subr.mxu1 %v423_v38  ;;  %687 = vmatpush2.msra.mxu0 %v358_v39  ;;  %v1097_v38 = vunpack.c.h.bf16 %v1150_v33  ;;  %v1065_v39 = vunpack.c.h.bf16 %v1142_v36  ;;  %v1096_v41 = vunpack.c.l.bf16 %v1150_v33 }
  0x93   :  { %758 = vmatpush2.msra.mxu1 %v422_v40  ;;  %688 = vmatprep.subr.mxu0 %v357_v43  ;;  %v1149_v40 = vld [vmem:[%s1454_s3 + $0x60] sm:$0xff]   ;;  %v1064_v43 = vunpack.c.l.bf16 %v1142_v36 }
  0x94   :  { %759 = vmatprep.subr.mxu1 %v421_v44  ;;  %689 = vmatpush2.msra.mxu0 %v356_v45  ;;  %v1093_v44 = vunpack.c.h.bf16 %v1149_v40  ;;  %v1061_v45 = vunpack.c.h.bf16 %v1141_v42  ;;  %v1092_v47 = vunpack.c.l.bf16 %v1149_v40 }
  0x95   :  { %760 = vmatpush2.msra.mxu1 %v420_v46  ;;  %690 = vmatprep.subr.mxu0 %v355_v49  ;;  %v1148_v46 = vld [vmem:[%s1454_s3 + $0x58] sm:$0xff]   ;;  %v1060_v49 = vunpack.c.l.bf16 %v1141_v42 }
  0x96   :  { %761 = vmatprep.subr.mxu1 %v419_v51  ;;  %691 = vmatpush2.msra.mxu0 %v354_v52  ;;  %v1089_v51 = vunpack.c.h.bf16 %v1148_v46  ;;  %v1057_v52 = vunpack.c.h.bf16 %v1140_v48  ;;  %v1088_v54 = vunpack.c.l.bf16 %v1148_v46 }
  0x97   :  { %762 = vmatpush2.msra.mxu1 %v418_v53  ;;  %692 = vmatprep.subr.mxu0 %v353_v57  ;;  %v1147_v53 = vld [vmem:[%s1454_s3 + $0x50] sm:$0xff]  }
  0x98   :  { %763 = vmatprep.subr.mxu1 %v417_v58  ;;  %693 = vmatpush2.msra.mxu0 %v352_v59  ;;  %v1085_v57 = vunpack.c.h.bf16 %v1147_v53  ;;  %v1053_v58 = vunpack.c.h.bf16 %v1139_v55  ;;  %v1084_v59 = vunpack.c.l.bf16 %v1147_v53 }
  0x99   :  { %764 = vmatpush2.msra.mxu1 %v416_v60  ;;  %694 = vmatprep.subr.mxu0 %v351_v63  ;;  %v1052_v60 = vunpack.c.l.bf16 %v1139_v55  ;;  %v1138_v63 = vld [vmem:[%s1454_s3 + $0x8] sm:$0xff]  }
  0x9a   :  { %765 = vmatprep.subr.mxu1 %v415_v0  ;;  %695 = vmatpush2.msra.mxu0 %v350_v2  ;;  %v1049_v0 = vunpack.c.h.bf16 %v1138_v63  ;;  %v1048_v2 = vunpack.c.l.bf16 %v1138_v63  ;;  %v1041_v63 = vld [vmem:[%s1457_s6] ss:$0 sm:$0xff] }
  0x9b   :  { %766 = vmatpush2.msra.mxu1 %v414_v3  ;;  %696 = vmatprep.subr.mxu0 %v349_v6  ;;  %v1145_v3 = vld [vmem:[%s1454_s3 + $0x40] sm:$0xff]   ;;  %v1045_v6 = vunpack.c.h.bf16 %v1043_v5 }
  0x9c   :  { %767 = vmatprep.subr.mxu1 %v413_v7  ;;  %697 = vmatpush2.msra.mxu0 %v348_v8  ;;  %v1077_v4 = vunpack.c.h.bf16 %v1145_v3  ;;  %v1076_v7 = vunpack.c.l.bf16 %v1145_v3  ;;  %v1044_v8 = vunpack.c.l.bf16 %v1043_v5 }
  0x9d   :  { %768 = vmatpush2.msra.mxu1 %v412_v9  ;;  %698 = vmatprep.subr.mxu0 %v347_v13  ;;  %v1159_v9 = vld [vmem:[#allocation4 + $0x38] sm:$0xff]  }
  0x9e   :  { %769 = vmatprep.subr.mxu1 %v411_v14  ;;  %699 = vmatpush2.msra.mxu0 %v346_v16  ;;  %v1136_v13 = vunpack.c.l.bf16 %v1159_v9  ;;  %v1133_v14 = vunpack.c.h.bf16 %v1158_v10  ;;  %v1132_v16 = vunpack.c.l.bf16 %v1158_v10 }
  0x9f   :  { %770 = vmatpush2.msra.mxu1 %v410_v17  ;;  %700 = vmatprep.subr.mxu0 %v345_v18  ;;  %v1156_v18 = vld [vmem:[#allocation4 + $0x20] sm:$0xff]  }
  0xa0   :  { %771 = vmatprep.subr.mxu1 %v409_v19  ;;  %701 = vmatpush2.msra.mxu0 %v344_v20  ;;  %v1125_v20 = vunpack.c.h.bf16 %v1156_v18 }
  0xa1   :  { %702 = vmatprep.mubr.f32.mxu0 %v486_v21  ;;  %772 = vmatpush2.msra.mxu1 %v408_v22  ;;  %v1155_v21 = vld [vmem:[#allocation4 + $0x18] sm:$0xff]   ;;  %v1124_v22 = vunpack.c.l.bf16 %v1156_v18 }
  0xa2   :  { %773 = vmatprep.mubr.f32.mxu1 %v487_v23  ;;  %703 = vmatmul.mubr.f32.vlgmr.msra.gmra.mxu0 %v478_v12  ;;  %v1137_v12 = vunpack.c.h.bf16 %v1159_v9  ;;  %v1121_v23 = vunpack.c.h.bf16 %v1155_v21  ;;  %v1120_v24 = vunpack.c.l.bf16 %v1155_v21 }
  0xa3   :  { %774 = vmatmul.mubr.f32.vlgmr.msra.gmra.mxu1 %v485_v15  ;;  %1160 = vmatprep.subr.mxu0 %v1105_v26  ;;  %v1157_v15 = vld [vmem:[#allocation4 + $0x28] sm:$0xff]   ;;  %v444_v26 = vsub.s32 0, %v1357_v35 }
  0xa4   :  { %1161 = vmatpush3.msra.mxu0 %v1073_v27  ;;  %1212 = vmatprep.subr.mxu1 %v1309_v11  ;;  %v1129_v17 = vunpack.c.h.bf16 %v1157_v15  ;;  %v1128_v19 = vunpack.c.l.bf16 %v1157_v15  ;;  %v440_v27 = vld [vmem:[%s1453_s2] sm:$0x3] }
  0xa5   :  { %1162 = vmatprep.subr.mxu0 %v1104_v28  ;;  %1213 = vmatpush3.msra.mxu1 %v1137_v12  ;;  %v448_v28 = vsub.s32 1, %v1357_v35 }
  0xa6   :  { %1163 = vmatpush3.msra.mxu0 %v1072_v30  ;;  %1214 = vmatprep.subr.mxu1 %v1309_v11  ;;  %v445_v30 = vrot.slane %v440_v27, %v444_v26 }
  0xa7   :  { %1164 = vmatprep.subr.mxu0 %v1101_v31  ;;  %1215 = vmatpush3.msra.mxu1 %v1136_v13  ;;  %v449_v31 = vrot.slane %v440_v27, %v448_v28 }
  0xa8   :  { %1165 = vmatpush3.msra.mxu0 %v1069_v32  ;;  %1216 = vmatprep.subr.mxu1 %v1309_v11 }
  0xa9   :  { %1166 = vmatprep.subr.mxu0 %v1100_v34  ;;  %1217 = vmatpush3.msra.mxu1 %v1133_v14 }
  0xaa   :  { %1167 = vmatpush3.msra.mxu0 %v1068_v37  ;;  %1218 = vmatprep.subr.mxu1 %v1309_v11 }
  0xab   :  { %1168 = vmatprep.subr.mxu0 %v1097_v38  ;;  %1219 = vmatpush3.msra.mxu1 %v1132_v16 }
  0xac   :  { %1169 = vmatpush3.msra.mxu0 %v1065_v39  ;;  %1220 = vmatprep.subr.mxu1 %v1309_v11 }
  0xad   :  { %1170 = vmatprep.subr.mxu0 %v1096_v41  ;;  %1221 = vmatpush3.msra.mxu1 %v1129_v17 }
  0xae   :  { %1171 = vmatpush3.msra.mxu0 %v1064_v43  ;;  %1222 = vmatprep.subr.mxu1 %v1309_v11 }
  0xaf   :  { %1172 = vmatprep.subr.mxu0 %v1093_v44  ;;  %1223 = vmatpush3.msra.mxu1 %v1128_v19 }
  0xb0   :  { %1173 = vmatpush3.msra.mxu0 %v1061_v45  ;;  %1224 = vmatprep.subr.mxu1 %v1309_v11 }
  0xb1   :  { %1174 = vmatprep.subr.mxu0 %v1092_v47  ;;  %1225 = vmatpush3.msra.mxu1 %v1125_v20 }
  0xb2   :  { %1175 = vmatpush3.msra.mxu0 %v1060_v49  ;;  %1226 = vmatprep.subr.mxu1 %v1309_v11  ;;  %v1116_v49 = vunpack.c.l.bf16 %v1154_v50 }
  0xb3   :  { %1176 = vmatprep.subr.mxu0 %v1089_v51  ;;  %1227 = vmatpush3.msra.mxu1 %v1124_v22  ;;  %v1153_v51 = vld [vmem:[#allocation4 + $0x8] sm:$0xff]  }
  0xb4   :  { %1177 = vmatpush3.msra.mxu0 %v1057_v52  ;;  %1228 = vmatprep.subr.mxu1 %v1309_v11  ;;  %v1113_v52 = vunpack.c.h.bf16 %v1153_v51  ;;  %v1112_v53 = vunpack.c.l.bf16 %v1153_v51 }
  0xb5   :  { %1178 = vmatprep.subr.mxu0 %v1088_v54  ;;  %1229 = vmatpush3.msra.mxu1 %v1121_v23  ;;  %v1107_v54 = vld [vmem:[#allocation4] sm:$0xff]  }
  0xb6   :  { %1179 = vmatpush3.msra.mxu0 %v1056_v56  ;;  %1230 = vmatprep.subr.mxu1 %v1309_v11  ;;  %v1109_v55 = vunpack.c.h.bf16 %v1107_v54  ;;  %v1108_v56 = vunpack.c.l.bf16 %v1107_v54 }
  0xb7   :  { %1180 = vmatprep.subr.mxu0 %v1085_v57  ;;  %1231 = vmatpush3.msra.mxu1 %v1120_v24 }
  0xb8   :  { %1181 = vmatpush3.msra.mxu0 %v1053_v58  ;;  %1232 = vmatprep.subr.mxu1 %v1309_v11  ;;  %v1040_v58 = vld [vmem:[%s1455_s4] ss:$0 sm:$0xff] }
  0xb9   :  { %1182 = vmatprep.subr.mxu0 %v1084_v59  ;;  %1233 = vmatpush3.msra.mxu1 %v1117_v25 }
  0xba   :  { %1183 = vmatpush3.msra.mxu0 %v1052_v60  ;;  %1234 = vmatprep.subr.mxu1 %v1309_v11 }
  0xbb   :  { %1184 = vmatprep.subr.mxu0 %v1081_v62  ;;  %1235 = vmatpush3.msra.mxu1 %v1116_v49 }
  0xbc   :  { %1185 = vmatpush3.msra.mxu0 %v1049_v0  ;;  %1236 = vmatprep.subr.mxu1 %v1309_v11 }
  0xbd   :  { %1186 = vmatprep.subr.mxu0 %v1080_v1  ;;  %1237 = vmatpush3.msra.mxu1 %v1113_v52 }
  0xbe   :  { %1187 = vmatpush3.msra.mxu0 %v1048_v2  ;;  %1238 = vmatprep.subr.mxu1 %v1309_v11 }
  0xbf   :  { %1188 = vmatprep.subr.mxu0 %v1077_v4  ;;  %1239 = vmatpush3.msra.mxu1 %v1112_v53 }
  0xc0   :  { %1189 = vmatpush3.msra.mxu0 %v1045_v6  ;;  %1240 = vmatprep.subr.mxu1 %v1309_v11 }
  0xc1   :  { %1190 = vmatprep.subr.mxu0 %v1076_v7  ;;  %1241 = vmatpush3.msra.mxu1 %v1109_v55 }
  0xc2   :  { %1191 = vmatpush3.msra.mxu0 %v1044_v8  ;;  %1242 = vmatprep.subr.mxu1 %v1309_v11 }
  0xc3   :  { %1243 = vmatpush3.msra.mxu1 %v1108_v56  ;;  %1244 = vmatprep.mubr.msk.f32.mxu1 %vm1310_vm0, %v1309_v11 }
 0x120   :  { %v562_v29 = vpop.f32.mrf.mxu0 }
 0x121   :  { %v563_v34 = vadd.f32 %v562_v29, %v445_v30 }
 0x122   :  { %v633_v32 = vpop.f32.mrf.mxu1  ;;  %v564_v33 = vpop.f32.mrf.mxu0 }
 0x123   :  { %v565_v36 = vadd.f32 %v564_v33, %v449_v31  ;;  %v634_v38 = vadd.f32 %v633_v32, %v563_v34 }
 0x124   :  { %v635_v37 = vpop.f32.mrf.mxu1 }
 0x125   :  { %v636_v41 = vadd.f32 %v635_v37, %v565_v36 }
 0x162   :  { %v704_v39 = vpop.f32.mrf.mxu0 }
 0x163   :  { %v775_v40 = vpop.f32.mrf.mxu1  ;;  %v705_v42 = vadd.f32 %v704_v39, %v634_v38 }
 0x164   :  { %v706_v43 = vpop.f32.mrf.mxu0 }
 0x165   :  { %v707_v44 = vadd.f32 %v706_v43, %v636_v41  ;;  %v776_v45 = vadd.f32 %v775_v40, %v705_v42  ;;  %v777_v46 = vpop.f32.mrf.mxu1 }
 0x167   :  { %v778_v47 = vadd.f32 %v777_v46, %v707_v44  ;;  %v780_v35 = vmax.f32 %v776_v45, 0.0 }
 0x169   :  { %v781_v48 = vmax.f32 %v778_v47, 0.0 }
 0x16b   :  { %917 = vmatprep.mubr.f32.mxu0 %v781_v48 }
 0x16c   :  { %918 = vmatmul.mubr.f32.vlgmr.msra.gmra.mxu0 %v780_v35 }
 0x22c   :  { %v1192_v57 = vpop.f32.mrf.mxu0 }
 0x22e   :  { %v1193_v59 = vpop.f32.mrf.mxu0 }
 0x22f   :  { %v1194_v60 = vadd.f32 %v1193_v59, %v1192_v57 }
 0x231   :  { %v920_v61 = vadd.f32 %v1194_v60, %v1040_v58 }
 0x233   :  { %v923_v62 = vmax.f32 %v920_v61, 0.0 }
 0x235   :  { %1245 = vmatmul.mubr.f32.vlgmr.msra.gmra.mxu1 %v923_v62 }
 0x2f5   :  { %v1029_v0 = vpop.f32.mrf.mxu1 }
 0x2f6   :  { %v1030_v1 = vadd.f32 %v1041_v63, %v1029_v0 }
 0x2f7   :  { %v1246_v2 = vpop.f32.mrf.mxu1 }
 0x2f8   :  { %1033 = vst [vmem:[%s1458_s7] sm:$0x3] %v1030_v1 }
 0x2f9   :  { %1038 = vsyncpa [#allocation3], 1 }
 0x2fa   :  { %1039 = vsyncpa [#allocation5], 1 }

</bundles_post_ra>
